<compile_context>
chip_gen: v5e
topology: v5e:2x2
jax: 0.10.0
libtpu: 0.0.40
codegen_flags: <defaults>
</compile_context>

<pallas_src>
import jax
import jax.numpy as jnp
from jax.experimental import pallas as pl
from jax.experimental.pallas import tpu as pltpu


def classifier_kernel(a_ref, xw1_ref, b1_ref, w2_ref, b2_ref,
                      pool_ref, wc_ref, bc_ref, y_ref):
    a = a_ref[...]                                                   # [M, M] bf16

    # ---- SGConv 1 (W1 pre-folded into X): h = relu(A @ (X W1) + b1) ----------
    h = jnp.dot(a, xw1_ref[...], preferred_element_type=jnp.float32) + b1_ref[...]
    h = jnp.maximum(h, 0.0)                                          # [M, hidden] f32

    # ---- SGConv 2: h2 = relu((A @ h) @ W2 + b2) -------------------------------
    ah = jnp.dot(a, h.astype(jnp.bfloat16), preferred_element_type=jnp.float32)
    h2 = jnp.dot(ah.astype(jnp.bfloat16), w2_ref[...],
                 preferred_element_type=jnp.float32) + b2_ref[...]   # [M, 256] f32
    h2 = jnp.maximum(h2, 0.0)

    # ---- mean-pool per graph as MXU matmul (1/N folded into pool entries) ----
    hg = jnp.dot(pool_ref[...], h2.astype(jnp.bfloat16),
                 preferred_element_type=jnp.float32)                 # [Bt, 256] f32

    # ---- classify: Linear(256 -> n_classes), lane-padded to 128 ---------------
    y = jnp.dot(hg.astype(jnp.bfloat16), wc_ref[...],
                preferred_element_type=jnp.float32) + bc_ref[...]    # [Bt, 128] f32
    y_ref[...] = y


def classifier_forward(a_norm, x, w1, b1, w2, b2, wc, bc):
    B, N, _ = a_norm.shape
    in_dim = x.shape[-1]
    hidden = w1.shape[-1]
    feat = w2.shape[-1]                       # 256
    n_classes = wc.shape[-1]
    bf16 = jnp.bfloat16
    hi = jax.lax.Precision.HIGHEST

    # ----- tiling choice --------------------------------------------------------
    # Target M = Bt*N = 256 (full 256-wide MXU pass on v6e/v7x), but keep >= 2 grid
    # steps so both v7x TensorCores get work; keep M a multiple of 8 for tiling.
    bt = max(1, 256 // N)
    bt = min(bt, max(1, -(-B // 2)))          # keep gs >= 2 whenever B >= 2
    while (bt * N) % 8 != 0:                  # sublane alignment of the M axis
        bt += 1
    gs = -(-B // bt)
    if gs > 1 and gs % 2 == 1:                # even step count for 2-TC megacore
        gs += 1
    b_pad = gs * bt
    m = bt * N

    pad = b_pad - B
    a_p = jnp.pad(a_norm, ((0, pad), (0, 0), (0, 0)))
    x_p = jnp.pad(x, ((0, pad), (0, 0), (0, 0)))

    # Block-diagonal adjacency per grid step: one dense MxM MXU matmul instead of Bt
    # tiny NxN matmuls.
    a_g = a_p.reshape(gs, bt, N, N).astype(bf16)
    eye = jnp.eye(bt, dtype=bf16)
    a_bd = (a_g[:, :, :, None, :] * eye[None, :, None, :, None]).reshape(gs, m, m)
    a_2d = a_bd.reshape(gs * m, m)                                      # [gs*M, M] bf16

    # Fold W1 into X once in XLA: kernel's SGConv-1 becomes A @ (X W1).
    xw1_2d = jnp.dot(x_p.reshape(gs * m, in_dim), w1,
                     precision=hi).astype(bf16)                         # [gs*M, hidden]

    # Grid-invariant mean-pool matrix with 1/N folded in (exact in bf16 for N=16).
    col_g = jnp.arange(m, dtype=jnp.int32) // N
    row_g = jnp.arange(bt, dtype=jnp.int32)
    pool_b = ((row_g[:, None] == col_g[None, :]).astype(jnp.float32)
              * (1.0 / N)).astype(bf16)                                 # [Bt, M]

    # Lane-dense padded classifier (zero columns beyond n_classes).
    c_pad = ((n_classes + 127) // 128) * 128
    wc_p = jnp.zeros((feat, c_pad), jnp.float32).at[:, :n_classes].set(wc).astype(bf16)
    bc_p = jnp.zeros((1, c_pad), jnp.float32).at[:, :n_classes].set(bc.reshape(1, -1))

    w2_b = w2.astype(bf16)
    b1_r = b1.reshape(1, hidden).astype(jnp.float32)
    b2_r = b2.reshape(1, feat).astype(jnp.float32)

    flops = 2 * gs * (2 * m * m * hidden          # A @ XW1  and  A @ h
                      + m * hidden * feat         # (A h) @ W2
                      + bt * m * feat             # pool @ h2
                      + bt * feat * c_pad)        # hg @ Wc
    bytes_accessed = (a_2d.size * 2 + xw1_2d.size * 2 + b_pad * c_pad * 4
                      # resident inputs (constant index_map) counted once:
                      + b1_r.size * 4 + w2_b.size * 2 + b2_r.size * 4
                      + pool_b.size * 2 + wc_p.size * 2 + bc_p.size * 4)

    out = pl.pallas_call(
        classifier_kernel,
        out_shape=jax.ShapeDtypeStruct((gs, bt, c_pad), jnp.float32),
        grid_spec=pl.GridSpec(
            grid=(gs,),
            in_specs=[
                pl.BlockSpec((m, m), lambda g: (g, 0)),               # block-diag A (bf16)
                pl.BlockSpec((m, hidden), lambda g: (g, 0)),          # X @ W1 (bf16)
                pl.BlockSpec((1, hidden), lambda g: (0, 0)),          # b1 (f32)
                pl.BlockSpec((hidden, feat), lambda g: (0, 0)),       # W2 (bf16)
                pl.BlockSpec((1, feat), lambda g: (0, 0)),            # b2 (f32)
                pl.BlockSpec((bt, m), lambda g: (0, 0)),              # pool / N (bf16)
                pl.BlockSpec((feat, c_pad), lambda g: (0, 0)),        # Wc padded (bf16)
                pl.BlockSpec((1, c_pad), lambda g: (0, 0)),           # bc padded (f32)
            ],
            out_specs=pl.BlockSpec((None, bt, c_pad), lambda g: (g, 0, 0)),
        ),
        compiler_params=pltpu.CompilerParams(
            dimension_semantics=("parallel",)),
        cost_estimate=pl.CostEstimate(flops=flops, transcendentals=0,
                                      bytes_accessed=bytes_accessed),
    )(a_2d, xw1_2d, b1_r, w2_b, b2_r, pool_b, wc_p, bc_p)

    return out.reshape(b_pad, c_pad)[:B, :n_classes]


def reference_forward(a_norm, x, w1, b1, w2, b2, wc, bc):
    # Pure-JAX reference mirroring the kernel's bf16-input / f32-accumulate math.
    f32 = jnp.float32
    hi = jax.lax.Precision.HIGHEST
    N = a_norm.shape[1]
    a = a_norm.astype(jnp.bfloat16).astype(f32)
    xw1 = jnp.einsum("bnf,fh->bnh", x, w1, precision=hi)
    xw1 = xw1.astype(jnp.bfloat16).astype(f32)
    w2b = w2.astype(jnp.bfloat16).astype(f32)
    wcb = wc.astype(jnp.bfloat16).astype(f32)

    h = jnp.maximum(jnp.einsum("bnm,bmh->bnh", a, xw1, precision=hi) + b1, 0.0)

    hb = h.astype(jnp.bfloat16).astype(f32)
    ah = jnp.einsum("bnm,bmh->bnh", a, hb, precision=hi)
    ah = ah.astype(jnp.bfloat16).astype(f32)
    h2 = jnp.maximum(jnp.einsum("bnh,hk->bnk", ah, w2b, precision=hi) + b2, 0.0)

    h2b = h2.astype(jnp.bfloat16).astype(f32)
    inv_n = jnp.asarray(1.0 / N, jnp.bfloat16).astype(f32)
    hg = h2b.sum(axis=1) * inv_n
    hgb = hg.astype(jnp.bfloat16).astype(f32)
    return jnp.einsum("bk,kc->bc", hgb, wcb, precision=hi) + bc.reshape(1, -1)


if __name__ == "__main__":
    B, N = 16, 16                       # 16 graphs of 16 nodes -> 2 grid steps of 8 graphs
    in_dim, hidden, n_classes = 4, 32, 10

    key = jax.random.PRNGKey(0)
    k_adj, k_x, k_w1, k_b1, k_w2, k_b2, k_wc, k_bc = jax.random.split(key, 8)

    # Random symmetric binary adjacency (no self-loops), per graph.
    adj_raw = jax.random.bernoulli(k_adj, 0.3, (B, N, N)).astype(jnp.float32)
    adj = jnp.clip(adj_raw + jnp.swapaxes(adj_raw, -1, -2), 0.0, 1.0)
    adj = adj * (1.0 - jnp.eye(N, dtype=jnp.float32))

    # Symmetric normalization D^-1/2 A D^-1/2 (degrees clamped >= 1, as in DGL SGConv).
    deg = jnp.clip(adj.sum(axis=-1), 1.0, None)
    d_inv_sqrt = 1.0 / jnp.sqrt(deg)
    a_norm = adj * d_inv_sqrt[:, :, None] * d_inv_sqrt[:, None, :]

    # Node features and parameters (Linear weights stored as [in, out], biases 1-D).
    x = jax.random.normal(k_x, (B, N, in_dim), dtype=jnp.float32)
    w1 = 0.1 * jax.random.normal(k_w1, (in_dim, hidden), dtype=jnp.float32)
    b1 = 0.1 * jax.random.normal(k_b1, (hidden,), dtype=jnp.float32)
    w2 = 0.1 * jax.random.normal(k_w2, (hidden, 256), dtype=jnp.float32)
    b2 = 0.1 * jax.random.normal(k_b2, (256,), dtype=jnp.float32)
    wc = 0.1 * jax.random.normal(k_wc, (256, n_classes), dtype=jnp.float32)
    bc = 0.1 * jax.random.normal(k_bc, (n_classes,), dtype=jnp.float32)

    y = classifier_forward(a_norm, x, w1, b1, w2, b2, wc, bc)
    jax.block_until_ready(y)

    y_ref = reference_forward(a_norm, x, w1, b1, w2, b2, wc, bc)
    assert y.shape == (B, n_classes)
    assert jnp.allclose(y, y_ref, atol=1e-3, rtol=1e-3)

    print("KERNEL_OK")
</pallas_src>

<mosaic_0001>
module attributes {stable_mosaic.version = 11 : i64} {
  func.func @classifier_kernel(%arg0: i32, %arg1: memref<128x128xbf16, #tpu.memory_space<vmem>>, %arg2: memref<128x32xbf16, #tpu.memory_space<vmem>>, %arg3: memref<1x32xf32, #tpu.memory_space<vmem>>, %arg4: memref<32x256xbf16, #tpu.memory_space<vmem>>, %arg5: memref<1x256xf32, #tpu.memory_space<vmem>>, %arg6: memref<8x128xbf16, #tpu.memory_space<vmem>>, %arg7: memref<256x128xbf16, #tpu.memory_space<vmem>>, %arg8: memref<1x128xf32, #tpu.memory_space<vmem>>, %arg9: memref<1x8x128xf32, #tpu.memory_space<vmem>>) attributes {dimension_semantics = [#tpu.dimension_semantics<parallel>], iteration_bounds = array<i64: 2>, scalar_prefetch = 0 : i64, scratch_operands = 0 : i64, tpu.core_type = #tpu.core_type<tc>, window_params = [{transform_indices = @transform_0, window_bounds = array<i64: 128, 128>}, {transform_indices = @transform_1, window_bounds = array<i64: 128, 32>}, {pipeline_mode = #tpu.pipeline_mode<synchronous>, transform_indices = @transform_2, window_bounds = array<i64: 1, 32>}, {pipeline_mode = #tpu.pipeline_mode<synchronous>, transform_indices = @transform_3, window_bounds = array<i64: 32, 256>}, {pipeline_mode = #tpu.pipeline_mode<synchronous>, transform_indices = @transform_4, window_bounds = array<i64: 1, 256>}, {pipeline_mode = #tpu.pipeline_mode<synchronous>, transform_indices = @transform_5, window_bounds = array<i64: 8, 128>}, {pipeline_mode = #tpu.pipeline_mode<synchronous>, transform_indices = @transform_6, window_bounds = array<i64: 256, 128>}, {pipeline_mode = #tpu.pipeline_mode<synchronous>, transform_indices = @transform_7, window_bounds = array<i64: 1, 128>}, {transform_indices = @transform_8, window_bounds = array<i64: 1, 8, 128>}]} {
    %c0 = arith.constant 0 : index
    %c0_0 = arith.constant 0 : index
    %0 = vector.load %arg1[%c0, %c0_0] : memref<128x128xbf16, #tpu.memory_space<vmem>>, vector<128x128xbf16>
    %c0_1 = arith.constant 0 : index
    %c0_2 = arith.constant 0 : index
    %1 = vector.load %arg2[%c0_1, %c0_2] : memref<128x32xbf16, #tpu.memory_space<vmem>>, vector<128x32xbf16>
    %cst = arith.constant dense<0.000000e+00> : vector<128x32xf32>
    %2 = tpu.matmul %0, %1, %cst {dimension_numbers = #tpu.dot_dimension_numbers<[1], [0], [0], [1], [0, 0, 1, 1], [], []>} : vector<128x128xbf16>, vector<128x32xbf16>, vector<128x32xf32> -> vector<128x32xf32>
    %c0_3 = arith.constant 0 : index
    %c0_4 = arith.constant 0 : index
    %3 = vector.load %arg3[%c0_3, %c0_4] : memref<1x32xf32, #tpu.memory_space<vmem>>, vector<1x32xf32>
    %4 = vector.broadcast %3 : vector<1x32xf32> to vector<128x32xf32>
    %5 = arith.addf %2, %4 : vector<128x32xf32>
    %cst_5 = arith.constant 0.000000e+00 : f32
    %6 = vector.broadcast %cst_5 : f32 to vector<128x32xf32>
    %7 = arith.maximumf %5, %6 : vector<128x32xf32>
    %8 = arith.truncf %7 : vector<128x32xf32> to vector<128x32xbf16>
    %cst_6 = arith.constant dense<0.000000e+00> : vector<128x32xf32>
    %9 = tpu.matmul %0, %8, %cst_6 {dimension_numbers = #tpu.dot_dimension_numbers<[1], [0], [0], [1], [0, 0, 1, 1], [], []>} : vector<128x128xbf16>, vector<128x32xbf16>, vector<128x32xf32> -> vector<128x32xf32>
    %10 = arith.truncf %9 : vector<128x32xf32> to vector<128x32xbf16>
    %c0_7 = arith.constant 0 : index
    %c0_8 = arith.constant 0 : index
    %11 = vector.load %arg4[%c0_7, %c0_8] : memref<32x256xbf16, #tpu.memory_space<vmem>>, vector<32x256xbf16>
    %cst_9 = arith.constant dense<0.000000e+00> : vector<128x256xf32>
    %12 = tpu.matmul %10, %11, %cst_9 {dimension_numbers = #tpu.dot_dimension_numbers<[1], [0], [0], [1], [0, 0, 1, 1], [], []>} : vector<128x32xbf16>, vector<32x256xbf16>, vector<128x256xf32> -> vector<128x256xf32>
    %c0_10 = arith.constant 0 : index
    %c0_11 = arith.constant 0 : index
    %13 = vector.load %arg5[%c0_10, %c0_11] : memref<1x256xf32, #tpu.memory_space<vmem>>, vector<1x256xf32>
    %14 = vector.broadcast %13 : vector<1x256xf32> to vector<128x256xf32>
    %15 = arith.addf %12, %14 : vector<128x256xf32>
    %cst_12 = arith.constant 0.000000e+00 : f32
    %16 = vector.broadcast %cst_12 : f32 to vector<128x256xf32>
    %17 = arith.maximumf %15, %16 : vector<128x256xf32>
    %c0_13 = arith.constant 0 : index
    %c0_14 = arith.constant 0 : index
    %18 = vector.load %arg6[%c0_13, %c0_14] : memref<8x128xbf16, #tpu.memory_space<vmem>>, vector<8x128xbf16>
    %19 = arith.truncf %17 : vector<128x256xf32> to vector<128x256xbf16>
    %cst_15 = arith.constant dense<0.000000e+00> : vector<8x256xf32>
    %20 = tpu.matmul %18, %19, %cst_15 {dimension_numbers = #tpu.dot_dimension_numbers<[1], [0], [0], [1], [0, 0, 1, 1], [], []>} : vector<8x128xbf16>, vector<128x256xbf16>, vector<8x256xf32> -> vector<8x256xf32>
    %21 = arith.truncf %20 : vector<8x256xf32> to vector<8x256xbf16>
    %c0_16 = arith.constant 0 : index
    %c0_17 = arith.constant 0 : index
    %22 = vector.load %arg7[%c0_16, %c0_17] : memref<256x128xbf16, #tpu.memory_space<vmem>>, vector<256x128xbf16>
    %cst_18 = arith.constant dense<0.000000e+00> : vector<8x128xf32>
    %23 = tpu.matmul %21, %22, %cst_18 {dimension_numbers = #tpu.dot_dimension_numbers<[1], [0], [0], [1], [0, 0, 1, 1], [], []>} : vector<8x256xbf16>, vector<256x128xbf16>, vector<8x128xf32> -> vector<8x128xf32>
    %c0_19 = arith.constant 0 : index
    %c0_20 = arith.constant 0 : index
    %24 = vector.load %arg8[%c0_19, %c0_20] : memref<1x128xf32, #tpu.memory_space<vmem>>, vector<1x128xf32>
    %25 = vector.broadcast %24 : vector<1x128xf32> to vector<8x128xf32>
    %26 = arith.addf %23, %25 : vector<8x128xf32>
    %c0_21 = arith.constant 0 : index
    %c0_22 = arith.constant 0 : index
    %c0_23 = arith.constant 0 : index
    %27 = vector.load %arg9[%c0_21, %c0_22, %c0_23] : memref<1x8x128xf32, #tpu.memory_space<vmem>>, vector<1x8x128xf32>
    %28 = vector.shape_cast %27 : vector<1x8x128xf32> to vector<8x128xf32>
    %29 = vector.shape_cast %26 : vector<8x128xf32> to vector<1x8x128xf32>
    tpu.vector_store %arg9[%c0_21, %c0_22, %c0_23], %29 {strides = array<i32>} : memref<1x8x128xf32, #tpu.memory_space<vmem>>, vector<1x8x128xf32>,
    return
  }
  func.func @transform_0(%arg0: i32) -> (i32, i32) {
    %c0_i32 = arith.constant 0 : i32
    %c0_i32_0 = arith.constant 0 : i32
    return %arg0, %c0_i32 : i32, i32
  }
  func.func @transform_1(%arg0: i32) -> (i32, i32) {
    %c0_i32 = arith.constant 0 : i32
    %c0_i32_0 = arith.constant 0 : i32
    return %arg0, %c0_i32 : i32, i32
  }
  func.func @transform_2(%arg0: i32) -> (i32, i32) {
    %c0_i32 = arith.constant 0 : i32
    %c0_i32_0 = arith.constant 0 : i32
    %c0_i32_1 = arith.constant 0 : i32
    return %c0_i32, %c0_i32_0 : i32, i32
  }
  func.func @transform_3(%arg0: i32) -> (i32, i32) {
    %c0_i32 = arith.constant 0 : i32
    %c0_i32_0 = arith.constant 0 : i32
    %c0_i32_1 = arith.constant 0 : i32
    return %c0_i32, %c0_i32_0 : i32, i32
  }
  func.func @transform_4(%arg0: i32) -> (i32, i32) {
    %c0_i32 = arith.constant 0 : i32
    %c0_i32_0 = arith.constant 0 : i32
    %c0_i32_1 = arith.constant 0 : i32
    return %c0_i32, %c0_i32_0 : i32, i32
  }
  func.func @transform_5(%arg0: i32) -> (i32, i32) {
    %c0_i32 = arith.constant 0 : i32
    %c0_i32_0 = arith.constant 0 : i32
    %c0_i32_1 = arith.constant 0 : i32
    return %c0_i32, %c0_i32_0 : i32, i32
  }
  func.func @transform_6(%arg0: i32) -> (i32, i32) {
    %c0_i32 = arith.constant 0 : i32
    %c0_i32_0 = arith.constant 0 : i32
    %c0_i32_1 = arith.constant 0 : i32
    return %c0_i32, %c0_i32_0 : i32, i32
  }
  func.func @transform_7(%arg0: i32) -> (i32, i32) {
    %c0_i32 = arith.constant 0 : i32
    %c0_i32_0 = arith.constant 0 : i32
    %c0_i32_1 = arith.constant 0 : i32
    return %c0_i32, %c0_i32_0 : i32, i32
  }
  func.func @transform_8(%arg0: i32) -> (i32, i32, i32) {
    %c0_i32 = arith.constant 0 : i32
    %c0_i32_0 = arith.constant 0 : i32
    %c0_i32_1 = arith.constant 0 : i32
    return %arg0, %c0_i32, %c0_i32_0 : i32, i32, i32
  }
}

</mosaic_0001>

<bundles_post_ra>
// kernel: tpu_custom_call.1
= control target key start
LH: loop header
LB: loop body
LE: loop exit
PB: predicated region body
PF: predicated region fallthrough
CT: control target
= control target key end

     0   :  { %13 = vsyncpa [#allocation3], 0  ;;  %s1832_s0 = inlined_call_operand.vmem [shape: bf16[256,128], index: 0, kind: input, shape index: {}]   ;;  %s1833_s1 = inlined_call_operand.vmem [shape: bf16[256,32], index: 1, kind: input, shape index: {}]   ;;  %s1834_s2 = inlined_call_operand.vmem [shape: f32[1,32], index: 2, kind: input, shape index: {}]   ;;  %s1835_s3 = inlined_call_operand.vmem [shape: bf16[32,256], index: 3, kind: input, shape index: {}]   ;;  %s1836_s4 = inlined_call_operand.vmem [shape: f32[1,256], index: 4, kind: input, shape index: {}]   ;;  %s1837_s5 = inlined_call_operand.hbm [shape: bf16[8,128], index: 5, kind: input, shape index: {}]   ;;  %s1838_s6 = inlined_call_operand.hbm [shape: bf16[256,128], index: 6, kind: input, shape index: {}]   ;;  %s1839_s7 = inlined_call_operand.vmem [shape: f32[1,128], index: 7, kind: input, shape index: {}]   ;;  %s1840_s8 = inlined_call_operand.hbm [shape: f32[2,8,128], index: 8, kind: output, shape index: {}]  }
   0x1   :  { %14 = vsyncpa [#allocation6], 0 }
   0x2   :  { %15 = vsyncpa [#allocation4], 0 }
   0x3   :  { %17 = vsyncpa [#allocation4 + $0x1], 0  ;;  %s1579_s27 = smov 0   ;;  %s1581_s28 = smov 0  }
   0x4   :  { %s1583_s29 = smov 0   ;;  %s1585_s30 = smov 0  }
   0x5 LB: > { %s1600_s9 = sadd.s32 4294967295, %s1528_s30   ;;  %s1121_s10 = sadd.s32 4294967294, %s1528_s30   ;;  %s1528_s30 = sphi %s1585_s30, %s1847_s30   ;;  %s1524_s29 = sphi %s1583_s29, %s1846_s29   ;;  %s1520_s28 = sphi %s1581_s28, %s1845_s28   ;;  %s1516_s27 = sphi %s1579_s27, %s1844_s27  }
   0x6   : > { %s1604_s11 = sadd.s32 1, %s1528_s30   ;;  %s208_s12 = sadd.s32 1, %s1524_s29 }
   0x7   : > { %s205_s13 = ssub.s32 %s1528_s30, %s1604_s11  ;;  %p218_p0 = scmp.ne.s32.totalorder %s1524_s29, %s1520_s28 }
   0x8   : > { %p206_p1 = scmp.eq.s32.totalorder %s205_s13, 0  ;;  %p219_p2 = scmp.eq.s32.totalorder %s1600_s9, 1 }
   0x9   : > { %p224_p3 = scmp.ne.s32.totalorder %s1520_s28, %s1516_s27  ;;  %p225_p4 = scmp.eq.s32.totalorder %s1121_s10, 1 }
   0xa   : > { %s1615_s14 = scalar_select %p206_p1, %s1524_s29, %s208_s12  }
   0xb   : > { %p1617_p5 = por %p219_p2, %p218_p0  ;;  %p1621_p6 = por %p225_p4, %p224_p3 }
   0xc   : > { %p1122_p7 = scmp.ge.s32.totalorder %s1528_s30, 1  ;;  %p232_p8 = scmp.lt.s32.totalorder %s1528_s30, 3 }
   0xd   : > { %p1355_p9 = scmp.eq.s32.totalorder %s1600_s9, 0  ;;  %s253_s20 = sshll.u32 %s1837_s5, 4  ;;  %s254_s20 = int_to_ptr.hbm [resolvable:$true] %s253_s20 }
   0xe   : > { %p1628_p10 = pnand %p1122_p7, %p232_p8  ;;  %s1530_s21 = smov [#allocation2]  }
   0xf   : > { %s255_s22 = sshll.u32 %s1530_s21, 4  ;;  %s264_s25 = sshll.u32 %s1838_s6, 4  ;;  %s256_s22 = int_to_ptr.vmem [resolvable:$true] %s255_s22  ;;  %s265_s25 = int_to_ptr.hbm [resolvable:$true] %s264_s25 }
  0x10   : > { %p1344_p11 = pneg %p1628_p10  ;;  %s1531_s26 = smov [#allocation5]  }
  0x11   : > { %s266_s10 = sshll.u32 %s1531_s26, 4  ;;  %s1532_s12 = smov 64   ;;  %s267_s10 = int_to_ptr.vmem [resolvable:$true] %s266_s10 }
  0x12   : > { %p1345_p12 = pnand %p1355_p9, %p1344_p11  ;;  %s1533_s13 = smov 4  }
  0x13   : > { %303 = sbr.rel (%p1628_p10) target bundleno = 1041 (0x411), region = 52 }
  0x14   : > { %1347 = dma.hbm_to_vmem [thread:$0]  (!%p1345_p12), %s254_s20, 64, %s256_s22, [#allocation3]  }
  0x15   : > { %1350 = dma.hbm_to_vmem [thread:$0]  (!%p1345_p12), %s265_s25, 2048, %s267_s10, [#allocation6], %s1532_s12, %s1532_s12, %s1533_s13  }
  0x18   : > { %1503 = dma.done.wait (%p1355_p9), [#allocation3], 64  }
  0x19   : > { %1505 = vsyncadd (%p1355_p9), [#allocation3], 4294967232 }
  0x1a   : > { %1507 = dma.done.wait (%p1355_p9), [#allocation6], 2048  }
  0x1b   : > { %1509 = vsyncadd (%p1355_p9), [#allocation6], 4294965248  ;;  %s1130_s18 = sshll.u32 %s1600_s9, 4  ;;  %v1396_v17 = vld [vmem:[%s1834_s2] ss:$0 sm:$0xff]  ;;  %vm653_vm0 = vcmask 261120  }
  0x1c   : > { %p349_p13 = scmp.lt.s32.totalorder %s1130_s18, 31  ;;  %s345_s20 = sand.u32 1, %s1520_s28  }
  0x1d   : > { %s1129_s17 = sshll.u32 %s345_s20, 3  ;;  %s1478_s23 = scalar_lea.hbm %s1840_s8, 16 }
  0x1e   : > { %s1849_s18 = smov (!%p349_p13, %s1130_s18), 31  ;;  %s347_s10 = scalar_lea.vmem [#allocation7], %s1129_s17 }
  0x1f   : > { %s1131_s19 = sshll.u32 %s1849_s18, 2  ;;  %s1025_s12 = sshll.u32 %s347_s10, 4  ;;  %s1026_s12 = int_to_ptr.vmem [resolvable:$true] %s1025_s12 }
  0x20   : > { %s358_s21 = scalar_lea.vmem %s1833_s1, %s1131_s19  ;;  %s352_s24 = scalar_lea.vmem %s1832_s0, %s1131_s19 }
  0x21   : > { %v1313_v0 = vld [vmem:[%s358_s21 + $0x38] sm:$0xff]  ;;  %v1312_v1 = vld [vmem:[%s358_s21 + $0x30] sm:$0xff]  ;;  %v1311_v2 = vld [vmem:[%s358_s21 + $0x28] sm:$0xff] }
  0x22   : > { %493 = vmatpush.bf16.msra.mxu0 %v1313_v0  ;;  %v1310_v3 = vld [vmem:[%s358_s21 + $0x20] sm:$0xff]  ;;  %v1309_v4 = vld [vmem:[%s358_s21 + $0x18] sm:$0xff]  ;;  %v1308_v5 = vld [vmem:[%s358_s21 + $0x10] sm:$0xff] }
  0x23   : > { %v1307_v6 = vld [vmem:[%s358_s21 + $0x8] sm:$0xff]  ;;  %v1306_v7 = vld [vmem:[%s358_s21] sm:$0xff]  ;;  %v1665_v10 = vld [vmem:[%s352_s24 + $0x10] sm:$0xff]  ;;  %s1295_s21 = sshll.u32 %s1600_s9, 3  ;;  %s1013_s9 = scalar_lea.sflag [#allocation4], %s345_s20 }
  0x24   : > { %v1659_v8 = vld [vmem:[%s352_s24] sm:$0xff]  ;;  %v1662_v9 = vld [vmem:[%s352_s24 + $0x8] sm:$0xff]  ;;  %v1668_v11 = vld [vmem:[%s352_s24 + $0x18] sm:$0xff]  ;;  %s1023_s26 = scalar_lea.hbm %s1840_s8, %s1295_s21 }
  0x25   : > { %v1671_v12 = vld [vmem:[%s352_s24 + $0x20] sm:$0xff]  ;;  %v1674_v13 = vld [vmem:[%s352_s24 + $0x28] sm:$0xff]  ;;  %v1677_v14 = vld [vmem:[%s352_s24 + $0x30] sm:$0xff]  ;;  %s1027_s13 = sshll.u32 %s1023_s26, 4  ;;  %s1028_s13 = int_to_ptr.hbm [resolvable:$true] %s1027_s13 }
  0x26   : > { %494 = vmatpush.bf16.msra.mxu0 %v1312_v1  ;;  %v1680_v15 = vld [vmem:[%s352_s24 + $0x38] sm:$0xff]  ;;  %s1472_s18 = sshra.s32 %s1028_s13, 4  ;;  %s1473_s18 = int_to_ptr.hbm [resolvable:$true] %s1472_s18 }
  0x27   : > { %s1474_s19 = scalar_lea.hbm %s1473_s18, 8  ;;  %p1479_p3 = scmp.lt.s32.totalorder %s1473_s18, %s1840_s8 }
  0x28   : > { %p1475_p0 = scmp.ne.s32.totalorder %s1473_s18, %s1474_s19  ;;  %p1480_p4 = scmp.lt.s32.totalorder %s1478_s23, %s1474_s19 }
  0x2a   : > { %495 = vmatpush.bf16.msra.mxu0 %v1311_v2  ;;  %p1476_p1 = pnand %p1475_p0, %p1617_p5  ;;  %p1481_p7 = por %p1480_p4, %p1479_p3 }
  0x2c   : > { %p1477_p2 = pneg %p1476_p1 }
  0x2e   : > { %496 = vmatpush.bf16.msra.mxu0 %v1310_v3  ;;  %p1482_p8 = pnand %p1481_p7, %p1477_p2 }
  0x32   : > { %497 = vmatpush.bf16.msra.mxu0 %v1309_v4 }
  0x36   : > { %498 = vmatpush.bf16.msra.mxu0 %v1308_v5 }
  0x3a   : > { %499 = vmatpush.bf16.msra.mxu0 %v1307_v6 }
  0x3e   : > { %500 = vmatpush.bf16.msra.mxu0 %v1306_v7 }
  0x41   : > { %501 = vmatmul.bf16.vlgmr.msra.gmra.mxu0 %v1659_v8 }
  0x51   : > { %506 = vmatmul.bf16.gmra.mxu0 %v1662_v9 }
  0x61   : > { %511 = vmatmul.bf16.gmra.mxu0 %v1665_v10 }
  0x71   : > { %516 = vmatmul.bf16.gmra.mxu0 %v1668_v11 }
  0x81   : > { %521 = vmatmul.bf16.gmra.mxu0 %v1671_v12 }
  0x91   : > { %526 = vmatmul.bf16.gmra.mxu0 %v1674_v13 }
  0xa1   : > { %531 = vmatmul.bf16.gmra.mxu0 %v1677_v14 }
  0xb1   : > { %536 = vmatmul.bf16.gmra.mxu0 %v1680_v15 }
  0xbe   : > { %v502_v16 = vpop.f32.mrf.mxu0 }
  0xbf   : > { %v503_v18 = vadd.f32 %v1396_v17, %v502_v16 }
  0xc1   : > { %v542_v21 = vmax.f32 %v503_v18, 0.0  ;;  %v1317_v18 = vld [vmem:[%s1835_s3 + $0x14] sm:$0xf0] }
  0xc6   : > { %v504_v19 = vpop.f32.mrf.mxu0 }
  0xc7   : > { %v505_v20 = vadd.f32 %v1396_v17, %v504_v19  ;;  %v1314_v19 = vld [vmem:[%s1835_s3 + $0x4] sm:$0xf] }
  0xc9   : > { %v543_v22 = vmax.f32 %v505_v20, 0.0 }
  0xcb   : > { %v558_v23 = vpack.c.bf16 %v543_v22, %v542_v21  ;;  %v1202_v21 = vld [vmem:[%s1835_s3 + $0x8] sm:$0xf0] }
  0xce   : > { %v507_v24 = vpop.f32.mrf.mxu0 }
  0xcf   : > { %v508_v25 = vadd.f32 %v1396_v17, %v507_v24 }
  0xd1   : > { %v544_v28 = vmax.f32 %v508_v25, 0.0 }
  0xd6   : > { %v509_v26 = vpop.f32.mrf.mxu0 }
  0xd7   : > { %v510_v27 = vadd.f32 %v1396_v17, %v509_v26 }
  0xd9   : > { %v545_v29 = vmax.f32 %v510_v27, 0.0 }
  0xdb   : > { %v559_v30 = vpack.c.bf16 %v545_v29, %v544_v28 }
  0xde   : > { %v512_v31 = vpop.f32.mrf.mxu0 }
  0xdf   : > { %v513_v32 = vadd.f32 %v1396_v17, %v512_v31 }
  0xe1   : > { %v546_v35 = vmax.f32 %v513_v32, 0.0 }
  0xe6   : > { %v514_v33 = vpop.f32.mrf.mxu0 }
  0xe7   : > { %v515_v34 = vadd.f32 %v1396_v17, %v514_v33 }
  0xe9   : > { %v547_v36 = vmax.f32 %v515_v34, 0.0 }
  0xeb   : > { %v560_v37 = vpack.c.bf16 %v547_v36, %v546_v35 }
  0xee   : > { %v517_v38 = vpop.f32.mrf.mxu0 }
  0xef   : > { %v518_v39 = vadd.f32 %v1396_v17, %v517_v38 }
  0xf1   : > { %v548_v42 = vmax.f32 %v518_v39, 0.0 }
  0xf6   : > { %v519_v40 = vpop.f32.mrf.mxu0 }
  0xf7   : > { %v520_v41 = vadd.f32 %v1396_v17, %v519_v40 }
  0xf9   : > { %v549_v43 = vmax.f32 %v520_v41, 0.0 }
  0xfb   : > { %v561_v44 = vpack.c.bf16 %v549_v43, %v548_v42 }
  0xfe   : > { %v522_v45 = vpop.f32.mrf.mxu0 }
  0xff   : > { %v523_v3 = vadd.f32 %v1396_v17, %v522_v45  ;;  %v627_v45 = vld [vmem:[%s1836_s4] sm:$0x3] }
 0x101   : > { %v550_v7 = vmax.f32 %v523_v3, 0.0 }
 0x106   : > { %v524_v46 = vpop.f32.mrf.mxu0 }
 0x107   : > { %v525_v0 = vadd.f32 %v1396_v17, %v524_v46 }
 0x109   : > { %v551_v5 = vmax.f32 %v525_v0, 0.0 }
 0x10b   : > { %v562_v16 = vpack.c.bf16 %v551_v5, %v550_v7 }
 0x10e   : > { %v527_v47 = vpop.f32.mrf.mxu0 }
 0x10f   : > { %v528_v62 = vadd.f32 %v1396_v17, %v527_v47 }
 0x111   : > { %v552_v4 = vmax.f32 %v528_v62, 0.0 }
 0x116   : > { %v529_v48 = vpop.f32.mrf.mxu0 }
 0x117   : > { %v530_v59 = vadd.f32 %v1396_v17, %v529_v48  ;;  %v1737_v48 = vperm.slane %v627_v45, 0 }
 0x119   : > { %v553_v1 = vmax.f32 %v530_v59, 0.0 }
 0x11b   : > { %v563_v6 = vpack.c.bf16 %v553_v1, %v552_v4 }
 0x11e   : > { %v532_v49 = vpop.f32.mrf.mxu0 }
 0x11f   : > { %v533_v56 = vadd.f32 %v1396_v17, %v532_v49  ;;  %v1739_v49 = vperm.slane %v627_v45, 1 }
 0x121   : > { %v554_v63 = vmax.f32 %v533_v56, 0.0 }
 0x126   : > { %v534_v50 = vpop.f32.mrf.mxu0 }
 0x127   : > { %v535_v54 = vadd.f32 %v1396_v17, %v534_v50 }
 0x129   : > { %v555_v60 = vmax.f32 %v535_v54, 0.0 }
 0x12b   : > { %v564_v2 = vpack.c.bf16 %v555_v60, %v554_v63 }
 0x12e   : > { %v537_v51 = vpop.f32.mrf.mxu0 }
 0x12f   : > { %v538_v52 = vadd.f32 %v1396_v17, %v537_v51 }
 0x131   : > { %v556_v57 = vmax.f32 %v538_v52, 0.0 }
 0x136   : > { %v539_v53 = vpop.f32.mrf.mxu0 }
 0x137   : > { %v540_v55 = vadd.f32 %v1396_v17, %v539_v53  ;;  %v1208_v17 = vld [vmem:[%s1835_s3 + $0x10] sm:$0xf] }
 0x139   : > { %v557_v58 = vmax.f32 %v540_v55, 0.0 }
 0x13b   : > { %v565_v61 = vpack.c.bf16 %v557_v58, %v556_v57 }
 0x13d   : > { %566 = vmatpush.bf16.msra.mxu1 %v565_v61 }
 0x141   : > { %567 = vmatpush.bf16.msra.mxu1 %v564_v2 }
 0x145   : > { %568 = vmatpush.bf16.msra.mxu1 %v563_v6 }
 0x149   : > { %569 = vmatpush.bf16.msra.mxu1 %v562_v16 }
 0x14d   : > { %570 = vmatpush.bf16.msra.mxu1 %v561_v44 }
 0x151   : > { %571 = vmatpush.bf16.msra.mxu1 %v560_v37 }
 0x155   : > { %572 = vmatpush.bf16.msra.mxu1 %v559_v30 }
 0x159   : > { %573 = vmatpush.bf16.msra.mxu1 %v558_v23 }
 0x15c   : > { %574 = vmatmul.bf16.vlgmr.msra.gmra.mxu1 %v1659_v8  ;;  %v1316_v8 = vld [vmem:[%s1835_s3 + $0x14] sm:$0xf] }
 0x16c   : > { %579 = vmatmul.bf16.gmra.mxu1 %v1662_v9  ;;  %v1209_v9 = vor.u32 %v1317_v18, %v1208_v17 }
 0x16e   : > { %684 = vmatpush.bf16.msra.mxu2 %v1209_v9 }
 0x17c   : > { %584 = vmatmul.bf16.gmra.mxu1 %v1665_v10  ;;  %v1210_v10 = vld [vmem:[%s1835_s3 + $0x18] sm:$0xf0] }
 0x18c   : > { %589 = vmatmul.bf16.gmra.mxu1 %v1668_v11  ;;  %v1213_v11 = vor.u32 %v1316_v8, %v1210_v10 }
 0x18e   : > { %733 = vmatpush.bf16.msra.mxu3 %v1213_v11 }
 0x19c   : > { %594 = vmatmul.bf16.gmra.mxu1 %v1671_v12  ;;  %v1200_v12 = vld [vmem:[%s1835_s3] sm:$0xf] }
 0x1ac   : > { %599 = vmatmul.bf16.gmra.mxu1 %v1674_v13  ;;  %v1315_v13 = vld [vmem:[%s1835_s3 + $0x4] sm:$0xf0] }
 0x1ad   : > { %v1201_v20 = vor.u32 %v1315_v13, %v1200_v12 }
 0x1af   : > { %685 = vmatpush.bf16.msra.mxu2 %v1201_v20 }
 0x1bc   : > { %604 = vmatmul.bf16.gmra.mxu1 %v1677_v14  ;;  %v1205_v14 = vor.u32 %v1314_v19, %v1202_v21 }
 0x1be   : > { %734 = vmatpush.bf16.msra.mxu3 %v1205_v14 }
 0x1cc   : > { %609 = vmatmul.bf16.gmra.mxu1 %v1680_v15 }
 0x1d9   : > { %v575_v22 = vpop.f32.mrf.mxu1 }
 0x1e1   : > { %v577_v23 = vpop.f32.mrf.mxu1 }
 0x1e2   : > { %v615_v24 = vpack.c.bf16 %v577_v23, %v575_v22 }
 0x1e4   : > { %1214 = vmatmul.msk.bf16.vlgmr.msra.gmra.mxu2 %vm653_vm0, %v615_v24  ;;  %1222 = vmatmul.msk.bf16.vlgmr.msra.gmra.mxu3 %vm653_vm0, %v615_v24 }
 0x1e9   : > { %v580_v25 = vpop.f32.mrf.mxu1 }
 0x1f1   : > { %v582_v26 = vpop.f32.mrf.mxu1 }
 0x1f2   : > { %v616_v27 = vpack.c.bf16 %v582_v26, %v580_v25 }
 0x1f4   : > { %1215 = vmatmul.msk.bf16.gmra.mxu2 %vm653_vm0, %v616_v27  ;;  %1223 = vmatmul.msk.bf16.gmra.mxu3 %vm653_vm0, %v616_v27 }
 0x1f9   : > { %v585_v28 = vpop.f32.mrf.mxu1 }
 0x201   : > { %v587_v29 = vpop.f32.mrf.mxu1 }
 0x202   : > { %v617_v30 = vpack.c.bf16 %v587_v29, %v585_v28 }
 0x204   : > { %1216 = vmatmul.msk.bf16.gmra.mxu2 %vm653_vm0, %v617_v30  ;;  %1224 = vmatmul.msk.bf16.gmra.mxu3 %vm653_vm0, %v617_v30 }
 0x209   : > { %v590_v15 = vpop.f32.mrf.mxu1 }
 0x211   : > { %v592_v31 = vpop.f32.mrf.mxu1 }
 0x212   : > { %v618_v32 = vpack.c.bf16 %v592_v31, %v590_v15 }
 0x214   : > { %1217 = vmatmul.msk.bf16.gmra.mxu2 %vm653_vm0, %v618_v32  ;;  %1225 = vmatmul.msk.bf16.gmra.mxu3 %vm653_vm0, %v618_v32 }
 0x219   : > { %v595_v33 = vpop.f32.mrf.mxu1 }
 0x221   : > { %v597_v34 = vpop.f32.mrf.mxu1 }
 0x222   : > { %v619_v35 = vpack.c.bf16 %v597_v34, %v595_v33 }
 0x224   : > { %1218 = vmatmul.msk.bf16.gmra.mxu2 %vm653_vm0, %v619_v35  ;;  %1226 = vmatmul.msk.bf16.gmra.mxu3 %vm653_vm0, %v619_v35 }
 0x229   : > { %v600_v36 = vpop.f32.mrf.mxu1 }
 0x231   : > { %v602_v37 = vpop.f32.mrf.mxu1 }
 0x232   : > { %v620_v38 = vpack.c.bf16 %v602_v37, %v600_v36 }
 0x234   : > { %1219 = vmatmul.msk.bf16.gmra.mxu2 %vm653_vm0, %v620_v38  ;;  %1227 = vmatmul.msk.bf16.gmra.mxu3 %vm653_vm0, %v620_v38 }
 0x239   : > { %v605_v39 = vpop.f32.mrf.mxu1 }
 0x241   : > { %v607_v40 = vpop.f32.mrf.mxu1 }
 0x242   : > { %v621_v41 = vpack.c.bf16 %v607_v40, %v605_v39 }
 0x244   : > { %1220 = vmatmul.msk.bf16.gmra.mxu2 %vm653_vm0, %v621_v41  ;;  %1228 = vmatmul.msk.bf16.gmra.mxu3 %vm653_vm0, %v621_v41 }
 0x249   : > { %v610_v42 = vpop.f32.mrf.mxu1 }
 0x251   : > { %v612_v43 = vpop.f32.mrf.mxu1 }
 0x252   : > { %v622_v44 = vpack.c.bf16 %v612_v43, %v610_v42 }
 0x254   : > { %1221 = vmatmul.msk.bf16.gmra.mxu2 %vm653_vm0, %v622_v44  ;;  %1229 = vmatmul.msk.bf16.gmra.mxu3 %vm653_vm0, %v622_v44 }
 0x267   : > { %v687_v46 = vpop.f32.mrf.mxu2  ;;  %v736_v47 = vpop.f32.mrf.mxu3 }
 0x268   : > { %v688_v50 = vadd.f32 %v687_v46, %v1737_v48  ;;  %v737_v51 = vadd.f32 %v736_v47, %v1739_v49 }
 0x26a   : > { %v776_v56 = vmax.f32 %v688_v50, 0.0  ;;  %v777_v57 = vmax.f32 %v737_v51, 0.0 }
 0x26f   : > { %v689_v52 = vpop.f32.mrf.mxu2  ;;  %v738_v53 = vpop.f32.mrf.mxu3 }
 0x270   : > { %v690_v54 = vadd.f32 %v689_v52, %v1737_v48  ;;  %v739_v55 = vadd.f32 %v738_v53, %v1739_v49 }
 0x272   : > { %v778_v58 = vmax.f32 %v690_v54, 0.0  ;;  %v779_v59 = vmax.f32 %v739_v55, 0.0 }
 0x274   : > { %v1745_v60 = vpack.c.bf16 %v778_v58, %v776_v56  ;;  %v1747_v61 = vpack.c.bf16 %v779_v59, %v777_v57 }
 0x277   : > { %v692_v62 = vpop.f32.mrf.mxu2  ;;  %v741_v63 = vpop.f32.mrf.mxu3 }
 0x278   : > { %v693_v0 = vadd.f32 %v692_v62, %v1737_v48  ;;  %v742_v1 = vadd.f32 %v741_v63, %v1739_v49 }
 0x27a   : > { %v780_v6 = vmax.f32 %v693_v0, 0.0  ;;  %v781_v7 = vmax.f32 %v742_v1, 0.0 }
 0x27f   : > { %v694_v2 = vpop.f32.mrf.mxu2  ;;  %v743_v3 = vpop.f32.mrf.mxu3 }
 0x280   : > { %v695_v4 = vadd.f32 %v694_v2, %v1737_v48  ;;  %v744_v5 = vadd.f32 %v743_v3, %v1739_v49 }
 0x282   : > { %v782_v16 = vmax.f32 %v695_v4, 0.0  ;;  %v783_v17 = vmax.f32 %v744_v5, 0.0 }
 0x284   : > { %v1753_v18 = vpack.c.bf16 %v782_v16, %v780_v6  ;;  %v1755_v8 = vpack.c.bf16 %v783_v17, %v781_v7 }
 0x287   : > { %v697_v9 = vpop.f32.mrf.mxu2  ;;  %v746_v10 = vpop.f32.mrf.mxu3 }
 0x288   : > { %v698_v11 = vadd.f32 %v697_v9, %v1737_v48  ;;  %v747_v12 = vadd.f32 %v746_v10, %v1739_v49 }
 0x28a   : > { %v784_v14 = vmax.f32 %v698_v11, 0.0  ;;  %v785_v22 = vmax.f32 %v747_v12, 0.0 }
 0x28f   : > { %v699_v13 = vpop.f32.mrf.mxu2  ;;  %v748_v19 = vpop.f32.mrf.mxu3 }
 0x290   : > { %v700_v20 = vadd.f32 %v699_v13, %v1737_v48  ;;  %v749_v21 = vadd.f32 %v748_v19, %v1739_v49  ;;  %v1325_v13 = vld [vmem:[#allocation5 + $0x38] sm:$0xff] }
 0x291   : > { %v1333_v19 = vld [vmem:[#allocation5 + $0x78] sm:$0xff]  ;;  %985 = vmatpush.bf16.msrb.mxu0 %v1325_v13 }
 0x292   : > { %v786_v23 = vmax.f32 %v700_v20, 0.0  ;;  %v787_v24 = vmax.f32 %v749_v21, 0.0  ;;  %998 = vmatpush.bf16.msrb.mxu1 %v1333_v19 }
 0x294   : > { %v1761_v25 = vpack.c.bf16 %v786_v23, %v784_v14  ;;  %v1763_v26 = vpack.c.bf16 %v787_v24, %v785_v22 }
 0x297   : > { %v702_v27 = vpop.f32.mrf.mxu2  ;;  %v751_v28 = vpop.f32.mrf.mxu3 }
 0x298   : > { %v703_v29 = vadd.f32 %v702_v27, %v1737_v48  ;;  %v752_v30 = vadd.f32 %v751_v28, %v1739_v49  ;;  %v1324_v27 = vld [vmem:[#allocation5 + $0x30] sm:$0xff] }
 0x299   : > { %v1332_v28 = vld [vmem:[#allocation5 + $0x70] sm:$0xff]  ;;  %986 = vmatpush.bf16.msrb.mxu0 %v1324_v27 }
 0x29a   : > { %v788_v34 = vmax.f32 %v703_v29, 0.0  ;;  %v789_v35 = vmax.f32 %v752_v30, 0.0  ;;  %999 = vmatpush.bf16.msrb.mxu1 %v1332_v28 }
 0x29f   : > { %v704_v15 = vpop.f32.mrf.mxu2  ;;  %v753_v31 = vpop.f32.mrf.mxu3 }
 0x2a0   : > { %v705_v32 = vadd.f32 %v704_v15, %v1737_v48  ;;  %v754_v33 = vadd.f32 %v753_v31, %v1739_v49 }
 0x2a2   : > { %v790_v36 = vmax.f32 %v705_v32, 0.0  ;;  %v791_v37 = vmax.f32 %v754_v33, 0.0 }
 0x2a4   : > { %v1769_v38 = vpack.c.bf16 %v790_v36, %v788_v34  ;;  %v1771_v39 = vpack.c.bf16 %v791_v37, %v789_v35  ;;  %v1323_v36 = vld [vmem:[#allocation5 + $0x28] sm:$0xff] }
 0x2a5   : > { %v1331_v37 = vld [vmem:[#allocation5 + $0x68] sm:$0xff]  ;;  %987 = vmatpush.bf16.msrb.mxu0 %v1323_v36 }
 0x2a6   : > { %1000 = vmatpush.bf16.msrb.mxu1 %v1331_v37 }
 0x2a7   : > { %v707_v40 = vpop.f32.mrf.mxu2  ;;  %v756_v41 = vpop.f32.mrf.mxu3 }
 0x2a8   : > { %v708_v32 = vadd.f32 %v707_v40, %v1737_v48  ;;  %v757_v33 = vadd.f32 %v756_v41, %v1739_v49 }
 0x2af   : > { %v709_v42 = vpop.f32.mrf.mxu2  ;;  %v758_v43 = vpop.f32.mrf.mxu3 }
 0x2b0   : > { %v710_v23 = vadd.f32 %v709_v42, %v1737_v48  ;;  %v759_v24 = vadd.f32 %v758_v43, %v1739_v49 }
 0x2b2   : > { %v794_v42 = vmax.f32 %v710_v23, 0.0  ;;  %v795_v43 = vmax.f32 %v759_v24, 0.0 }
 0x2b7   : > { %v712_v44 = vpop.f32.mrf.mxu2  ;;  %v761_v45 = vpop.f32.mrf.mxu3 }
 0x2b8   : > { %v713_v20 = vadd.f32 %v712_v44, %v1737_v48  ;;  %v762_v21 = vadd.f32 %v761_v45, %v1739_v49 }
 0x2ba   : > { %v796_v34 = vmax.f32 %v713_v20, 0.0  ;;  %v797_v35 = vmax.f32 %v762_v21, 0.0 }
 0x2bf   : > { %v714_v46 = vpop.f32.mrf.mxu2  ;;  %v763_v47 = vpop.f32.mrf.mxu3 }
 0x2c0   : > { %v715_v16 = vadd.f32 %v714_v46, %v1737_v48  ;;  %v764_v17 = vadd.f32 %v763_v47, %v1739_v49  ;;  %v792_v46 = vmax.f32 %v708_v32, 0.0  ;;  %v793_v47 = vmax.f32 %v757_v33, 0.0 }
 0x2c2   : > { %v798_v29 = vmax.f32 %v715_v16, 0.0  ;;  %v799_v30 = vmax.f32 %v764_v17, 0.0  ;;  %v817_v40 = vpack.c.bf16 %v794_v42, %v792_v46  ;;  %v818_v41 = vpack.c.bf16 %v795_v43, %v793_v47 }
 0x2c4   : > { %v819_v44 = vpack.c.bf16 %v798_v29, %v796_v34  ;;  %v820_v45 = vpack.c.bf16 %v799_v30, %v797_v35 }
 0x2c7   : > { %v717_v50 = vpop.f32.mrf.mxu2  ;;  %v766_v51 = vpop.f32.mrf.mxu3 }
 0x2c8   : > { %v718_v2 = vadd.f32 %v717_v50, %v1737_v48  ;;  %v767_v3 = vadd.f32 %v766_v51, %v1739_v49  ;;  %v1321_v50 = vld [vmem:[#allocation5 + $0x18] sm:$0xff] }
 0x2c9   : > { %v1329_v51 = vld [vmem:[#allocation5 + $0x58] sm:$0xff] }
 0x2ca   : > { %v800_v14 = vmax.f32 %v718_v2, 0.0  ;;  %v801_v22 = vmax.f32 %v767_v3, 0.0 }
 0x2cf   : > { %v719_v52 = vpop.f32.mrf.mxu2  ;;  %v768_v53 = vpop.f32.mrf.mxu3 }
 0x2d0   : > { %v720_v62 = vadd.f32 %v719_v52, %v1737_v48  ;;  %v769_v63 = vadd.f32 %v768_v53, %v1739_v49  ;;  %v1320_v52 = vld [vmem:[#allocation5 + $0x10] sm:$0xff] }
 0x2d1   : > { %v1328_v53 = vld [vmem:[#allocation5 + $0x50] sm:$0xff] }
 0x2d2   : > { %v802_v9 = vmax.f32 %v720_v62, 0.0  ;;  %v803_v10 = vmax.f32 %v769_v63, 0.0 }
 0x2d4   : > { %v821_v15 = vpack.c.bf16 %v802_v9, %v800_v14  ;;  %v822_v31 = vpack.c.bf16 %v803_v10, %v801_v22 }
 0x2d7   : > { %v722_v54 = vpop.f32.mrf.mxu2  ;;  %v771_v55 = vpop.f32.mrf.mxu3 }
 0x2d8   : > { %v723_v56 = vadd.f32 %v722_v54, %v1737_v48  ;;  %v772_v57 = vadd.f32 %v771_v55, %v1739_v49  ;;  %v1319_v54 = vld [vmem:[#allocation5 + $0x8] sm:$0xff] }
 0x2d9   : > { %v1327_v55 = vld [vmem:[#allocation5 + $0x48] sm:$0xff] }
 0x2da   : > { %v804_v4 = vmax.f32 %v723_v56, 0.0  ;;  %v805_v5 = vmax.f32 %v772_v57, 0.0 }
 0x2df   : > { %v724_v58 = vpop.f32.mrf.mxu2  ;;  %v773_v59 = vpop.f32.mrf.mxu3 }
 0x2e0   : > { %v725_v0 = vadd.f32 %v724_v58, %v1737_v48  ;;  %v774_v1 = vadd.f32 %v773_v59, %v1739_v49  ;;  %v1322_v48 = vld [vmem:[#allocation5 + $0x20] sm:$0xff] }
 0x2e1   : > { %v1330_v49 = vld [vmem:[#allocation5 + $0x60] sm:$0xff]  ;;  %988 = vmatpush.bf16.msrb.mxu0 %v1322_v48 }
 0x2e2   : > { %v806_v6 = vmax.f32 %v725_v0, 0.0  ;;  %v807_v7 = vmax.f32 %v774_v1, 0.0  ;;  %1001 = vmatpush.bf16.msrb.mxu1 %v1330_v49 }
 0x2e4   : > { %v823_v11 = vpack.c.bf16 %v806_v6, %v804_v4  ;;  %v824_v12 = vpack.c.bf16 %v807_v7, %v805_v5 }
 0x2e5   : > { %989 = vmatpush.bf16.msrb.mxu0 %v1321_v50 }
 0x2e6   : > { %825 = vmatpush.bf16.msrb.mxu2 %v823_v11  ;;  %838 = vmatpush.bf16.msrb.mxu3 %v824_v12 }
 0x2e7   : > { %1002 = vmatpush.bf16.msrb.mxu1 %v1329_v51 }
 0x2e9   : > { %990 = vmatpush.bf16.msrb.mxu0 %v1320_v52 }
 0x2ea   : > { %826 = vmatpush.bf16.msrb.mxu2 %v821_v15  ;;  %839 = vmatpush.bf16.msrb.mxu3 %v822_v31 }
 0x2eb   : > { %1003 = vmatpush.bf16.msrb.mxu1 %v1328_v53 }
 0x2ed   : > { %991 = vmatpush.bf16.msrb.mxu0 %v1319_v54 }
 0x2ee   : > { %827 = vmatpush.bf16.msrb.mxu2 %v819_v44  ;;  %840 = vmatpush.bf16.msrb.mxu3 %v820_v45 }
 0x2ef   : > { %1004 = vmatpush.bf16.msrb.mxu1 %v1327_v55 }
 0x2f2   : > { %828 = vmatpush.bf16.msrb.mxu2 %v817_v40  ;;  %841 = vmatpush.bf16.msrb.mxu3 %v818_v41 }
 0x2f6   : > { %829 = vmatpush.bf16.msrb.mxu2 %v1769_v38  ;;  %842 = vmatpush.bf16.msrb.mxu3 %v1771_v39  ;;  %v1318_v38 = vld [vmem:[#allocation5] sm:$0xff] }
 0x2f7   : > { %v1326_v39 = vld [vmem:[#allocation5 + $0x40] sm:$0xff]  ;;  %992 = vmatpush.bf16.msrb.mxu0 %v1318_v38 }
 0x2f8   : > { %1005 = vmatpush.bf16.msrb.mxu1 %v1326_v39 }
 0x2fa   : > { %830 = vmatpush.bf16.msrb.mxu2 %v1761_v25  ;;  %843 = vmatpush.bf16.msrb.mxu3 %v1763_v26  ;;  %v808_v25 = vld [vmem:[#allocation2] sm:$0xf] }
 0x2fe   : > { %831 = vmatpush.bf16.msrb.mxu2 %v1753_v18  ;;  %844 = vmatpush.bf16.msrb.mxu3 %v1755_v8 }
 0x302   : > { %832 = vmatpush.bf16.msrb.mxu2 %v1745_v60  ;;  %845 = vmatpush.bf16.msrb.mxu3 %v1747_v61  ;;  %v1397_v60 = vld [vmem:[%s1839_s7] ss:$0 sm:$0xff] }
 0x305   : > { %833 = vmatmul.bf16.vlgmr.msrb.gmra.mxu2 %v808_v25  ;;  %846 = vmatmul.bf16.vlgmr.msrb.gmra.mxu3 %v808_v25 }
 0x388   : > { %v834_v26 = vpop.f32.mrf.mxu2  ;;  %v847_v56 = vpop.f32.mrf.mxu3 }
 0x389   : > { %v851_v18 = vpack.c.bf16 %v834_v26, %v834_v26  ;;  %v852_v57 = vpack.c.bf16 %v847_v56, %v847_v56 }
 0x38b   : > { %993 = vmatmul.bf16.vlgmr.msrb.gmra.mxu0 %v851_v18  ;;  %1006 = vmatmul.bf16.vlgmr.msrb.gmra.mxu1 %v852_v57 }
 0x390   : > { %v836_v8 = vpop.f32.mrf.mxu2  ;;  %v849_v58 = vpop.f32.mrf.mxu3 }
 0x408   : > { %v994_v61 = vpop.f32.mrf.mxu0  ;;  %v1007_v59 = vpop.f32.mrf.mxu1 }
 0x409   : > { %v995_v62 = vadd.f32 %v1397_v60, %v994_v61 }
 0x40b   : > { %v1008_v63 = vadd.f32 %v1007_v59, %v995_v62 }
 0x40d   : > { %1011 = vst [vmem:[%s347_s10] sm:$0xff] %v1008_v63 }
 0x40e   : > { %1485 = shalt.err (!%p1482_p8)
}
 0x40f   : > { %1342 = dma.vmem_to_hbm [thread:$0]  (%p1617_p5), %s1026_s12, 128, %s1028_s13, %s1013_s9  }
 0x410   : > { %v996_v0 = vpop.f32.mrf.mxu0  ;;  %v1009_v1 = vpop.f32.mrf.mxu1 }
 0x411 PF: > { %p1359_p9 = scmp.ge.s32.totalorder %s1528_s30, 2  ;;  %s1039_s20 = sand.u32 1, %s1516_s27  }
 0x412   : > { %s1040_s25 = scalar_lea.sflag [#allocation4], %s1039_s20 }
 0x413   : > { %p1352_p10 = pnand %p1359_p9, %p1621_p6 }
 0x415   : > { %p1353_p11 = pneg %p1352_p10 }
 0x417   : > { %1511 = dma.done.wait (%p1353_p11), %s1040_s25, 128  }
 0x418   : > { %1513 = vsyncadd (%p1353_p11), %s1040_s25, 4294967168  ;;  %p20_p5 = scmp.ge.s32.totalorder %s1604_s11, 4   ;;  %s1844_s27 = smov %s1520_s28 }
 0x419   : > { %s1845_s28 = smov %s1524_s29  ;;  %s1846_s29 = smov %s1615_s14 }
 0x41a   : > { %s1847_s30 = smov %s1604_s11  ;;  %22 = sbr.rel (!%p20_p5) target bundleno = 5 (0x5), region = 99 }
 0x41f   :  { %1046 = vsyncpa [#allocation3], 1 }
 0x420   :  { %1048 = vsyncpa [#allocation3 + $0x1], 1 }
 0x421   :  { %1049 = vsyncpa [#allocation6], 1 }
 0x422   :  { %1050 = vsyncpa [#allocation4], 1 }
 0x423   :  { %1052 = vsyncpa [#allocation4 + $0x1], 1 }

</bundles_post_ra>
